<compile_context>
chip_gen: v5e
topology: v5e:2x2
jax: 0.10.0
libtpu: 0.0.40
codegen_flags: <defaults>
</compile_context>

<pallas_src>
import math

import jax
import jax.numpy as jnp
from jax.experimental import pallas as pl
from jax.experimental.pallas import tpu as pltpu


def _make_kernel(N, tn, bw, matmul_dtype):
    """x_ref/x0_ref/o_ref: (1, N, tn); aeff_ref: (N, N) matmul_dtype;
    wbd_ref: (bw, bw) matmul_dtype (block-diagonal temporal weight)."""
    n_chunks = tn // bw

    def kernel(x_ref, x0_ref, aeff_ref, wbd_ref, o_ref):
        x = x_ref[0]                                     # (N, tn) f32
        xm = x.astype(matmul_dtype)                      # bf16 MXU operand
        wm = wbd_ref[...]

        # spatial(x) with alpha/2 pre-folded into A_eff -> one MXU matmul.
        sp = jnp.dot(aeff_ref[...], xm, preferred_element_type=jnp.float32)

        # time(x, 'edge'): block-diagonal temporal weight -> one (or a few
        # 128-lane-aligned) MXU matmuls, consumed directly (no scratch).
        if n_chunks == 1:
            tm = jnp.dot(xm, wm, preferred_element_type=jnp.float32)
        else:
            parts = [
                jnp.dot(xm[:, c * bw:(c + 1) * bw], wm,
                        preferred_element_type=jnp.float32)
                for c in range(n_chunks)
            ]
            tm = jnp.concatenate(parts, axis=1)

        # f32 epilogue: -2x kept exact in f32 (no bf16 rounding on that term).
        o_ref[0] = (sp - 2.0 * x + tm + x0_ref[0]).astype(o_ref.dtype)

    return kernel


def _pick_dst_tile(N, T, target_lanes=1024):
    """Dst-nodes per lane tile (KB).

    Either the whole (dst*time) extent fits in one tile (small problems), or KB is a
    multiple of lcm(T,128)//T so tn = KB*T is a multiple of 128; the wrapper pads the
    dst-node axis so KB need NOT divide N. No silent full-width fallback for large N*T.
    """
    NT = N * T
    tl = max(target_lanes, 128)
    if NT <= tl:
        return N                                   # single full-width tile
    unit = math.lcm(T, 128) // T                   # dst nodes per 128-lane group
    kb = (tl // (unit * T)) * unit
    return max(kb, unit)


def odefunc_edge_forward(x, x0, alpha_param, adj, w_time, *,
                         matmul_dtype=jnp.bfloat16, target_lanes=1024):
    """x, x0: (B, N, N, T); alpha_param: (N,); adj: (N, N); w_time: (T, T)."""
    B, N, N2, T = x.shape
    assert N == N2 and adj.shape == (N, N) and w_time.shape == (T, T)

    KB = _pick_dst_tile(N, T, target_lanes)
    n_lane_tiles = -(-N // KB)                     # cdiv
    N_dst_pad = n_lane_tiles * KB
    tn = KB * T
    NT_pad = N_dst_pad * T

    # Pad the dst-node axis so lane tiles divide evenly. Padded dst nodes are zeros:
    # the temporal map acts within a dst node's T-chunk and the spatial map mixes only
    # src nodes, so padded lanes stay self-contained and are sliced off at the end.
    if N_dst_pad != N:
        pad = [(0, 0), (0, 0), (0, N_dst_pad - N), (0, 0)]
        xp, x0p = jnp.pad(x, pad), jnp.pad(x0, pad)
    else:
        xp, x0p = x, x0

    x2 = xp.reshape(B, N, NT_pad)                  # lane-dense (dst, time) flattening
    x02 = x0p.reshape(B, N, NT_pad)

    # Fold sigmoid(alpha)/2 into the adjacency once (O(N^2), outside the kernel).
    a_eff = ((jax.nn.sigmoid(alpha_param) * 0.5)[:, None] * adj).astype(matmul_dtype)

    # Block-diagonal temporal weight, built once. For STGODE-scale T (<=32) it spans
    # the whole tile (single matmul); for larger T use a 128-lane-aligned chunk width.
    cw = math.lcm(T, 128)
    bw = tn if (T <= 32 or tn % cw != 0) else cw
    # TODO(synk): for very large T (bw*bw weight > a few MB) a chunked/accumulator
    #             temporal variant would be preferable to the block-diagonal weight.
    w_bd = jnp.kron(jnp.eye(bw // T, dtype=w_time.dtype), w_time).astype(matmul_dtype)

    itemsize = jnp.dtype(x.dtype).itemsize
    msize = jnp.dtype(matmul_dtype).itemsize
    # Accurate per-step VMEM: double-buffered x/x0/out tiles + constants + in-kernel
    # temporaries (bf16 copy of x, sp, tm, epilogue result).
    est = (2 * 3 * N * tn * itemsize
           + 2 * (N * N + bw * bw) * msize
           + N * tn * (msize + 3 * 4))
    vmem_limit = int(min(40 * 2**20, max(16 * 2**20, 2 * est)))

    cost = pl.CostEstimate(
        flops=int(2 * B * N * N * NT_pad + 2 * B * N * NT_pad * bw),
        transcendentals=0,
        bytes_accessed=int(3 * B * N * NT_pad * itemsize
                           + (N * N + bw * bw) * msize),
    )

    kernel = _make_kernel(N, tn, bw, matmul_dtype)

    out2 = pl.pallas_call(
        kernel,
        out_shape=jax.ShapeDtypeStruct((B, N, NT_pad), x.dtype),
        grid_spec=pltpu.PrefetchScalarGridSpec(
            num_scalar_prefetch=0,
            grid=(B, n_lane_tiles),
            in_specs=[
                pl.BlockSpec((1, N, tn), lambda b, c: (b, 0, c)),   # x
                pl.BlockSpec((1, N, tn), lambda b, c: (b, 0, c)),   # x0
                pl.BlockSpec((N, N), lambda b, c: (0, 0)),          # A_eff
                pl.BlockSpec((bw, bw), lambda b, c: (0, 0)),        # W_bd
            ],
            out_specs=pl.BlockSpec((1, N, tn), lambda b, c: (b, 0, c)),
        ),
        compiler_params=pltpu.CompilerParams(
            dimension_semantics=("parallel", "parallel"),
            vmem_limit_bytes=vmem_limit,
        ),
        cost_estimate=cost,
    )(x2, x02, a_eff, w_bd)

    out = out2.reshape(B, N, N_dst_pad, T)
    if N_dst_pad != N:
        out = out[:, :, :N, :]
    return out


def odefunc_edge_reference(x, x0, alpha_param, adj, w_time, matmul_dtype=None):
    """Pure-JAX reference. matmul_dtype=None: literal module math in f32.
    matmul_dtype=bf16: mirrors the kernel's operand rounding (alpha folded into adj,
    bf16 matmul operands, f32 accumulation, exact f32 -2x / +x0)."""
    if matmul_dtype is not None:
        a_eff = ((jax.nn.sigmoid(alpha_param) * 0.5)[:, None] * adj).astype(matmul_dtype)
        x_m = x.astype(matmul_dtype)
        w_m = w_time.astype(matmul_dtype)
        sp = jnp.einsum('im,bmkt->bikt', a_eff, x_m,
                        preferred_element_type=jnp.float32)
        tm = jnp.einsum('bnkt,ts->bnks', x_m, w_m,
                        preferred_element_type=jnp.float32)
        return sp - 2.0 * x + tm + x0
    a = jax.nn.sigmoid(alpha_param)[None, :, None, None]
    sp = jnp.einsum('im,bmkt->bikt', adj, x)
    tm = jnp.einsum('bnkt,ts->bnks', x, w_time)
    return a / 2.0 * sp - x + tm - x + x0


def _run_case(B, N, T, key, target_lanes=1024):
    k1, k2, k3, k4 = jax.random.split(key, 4)
    x = jax.random.normal(k1, (B, N, N, T), dtype=jnp.float32)
    x0 = jax.random.normal(k2, (B, N, N, T), dtype=jnp.float32)       # module's self.x0
    adj = jax.random.normal(k3, (N, N), dtype=jnp.float32) * 0.2
    w_time = jax.random.normal(k4, (T, T), dtype=jnp.float32) * 0.1
    alpha_param = 0.8 * jnp.ones((N,), dtype=jnp.float32)             # nn.Parameter(0.8*ones(n))

    out = odefunc_edge_forward(x, x0, alpha_param, adj, w_time,
                               target_lanes=target_lanes)
    out = jax.block_until_ready(out)
    assert out.shape == (B, N, N, T)

    # Tight check vs a reference using the same bf16 operand rounding as the kernel.
    ref_b = odefunc_edge_reference(x, x0, alpha_param, adj, w_time,
                                   matmul_dtype=jnp.bfloat16)
    err_b = float(jnp.max(jnp.abs(out - ref_b)))
    assert jnp.allclose(out, ref_b, rtol=2e-3, atol=2e-3), err_b

    # Looser sanity check vs the literal f32 module math.
    ref_f = odefunc_edge_reference(x, x0, alpha_param, adj, w_time)
    err_f = float(jnp.max(jnp.abs(out - ref_f)))
    assert jnp.allclose(out, ref_f, rtol=5e-2, atol=5e-2), err_f


if __name__ == "__main__":
    key = jax.random.PRNGKey(0)
    k_a, k_b = jax.random.split(key)

    # Small shape consistent with the module: single full-width lane tile.
    _run_case(B=2, N=16, T=8, key=k_a)

    # Exercise the padded multi-tile path (N not divisible by KB, 2 lane tiles).
    _run_case(B=2, N=20, T=8, key=k_b, target_lanes=128)

    print("KERNEL_OK")
</pallas_src>

<mosaic_0001>
module attributes {stable_mosaic.version = 11 : i64} {
  func.func @kernel(%arg0: i32, %arg1: i32, %arg2: memref<1x16x128xf32, #tpu.memory_space<vmem>>, %arg3: memref<1x16x128xf32, #tpu.memory_space<vmem>>, %arg4: memref<16x16xbf16, #tpu.memory_space<vmem>>, %arg5: memref<128x128xbf16, #tpu.memory_space<vmem>>, %arg6: memref<1x16x128xf32, #tpu.memory_space<vmem>>) attributes {dimension_semantics = [#tpu.dimension_semantics<parallel>, #tpu.dimension_semantics<parallel>], iteration_bounds = array<i64: 2, 1>, scalar_prefetch = 0 : i64, scratch_operands = 0 : i64, tpu.core_type = #tpu.core_type<tc>, window_params = [{transform_indices = @transform_0, window_bounds = array<i64: 1, 16, 128>}, {transform_indices = @transform_1, window_bounds = array<i64: 1, 16, 128>}, {pipeline_mode = #tpu.pipeline_mode<synchronous>, transform_indices = @transform_2, window_bounds = array<i64: 16, 16>}, {pipeline_mode = #tpu.pipeline_mode<synchronous>, transform_indices = @transform_3, window_bounds = array<i64: 128, 128>}, {transform_indices = @transform_4, window_bounds = array<i64: 1, 16, 128>}]} {
    %c0 = arith.constant 0 : index
    %c0_0 = arith.constant 0 : index
    %c0_1 = arith.constant 0 : index
    %0 = vector.load %arg2[%c0, %c0_0, %c0_1] : memref<1x16x128xf32, #tpu.memory_space<vmem>>, vector<1x16x128xf32>
    %1 = vector.shape_cast %0 : vector<1x16x128xf32> to vector<16x128xf32>
    %2 = arith.truncf %1 : vector<16x128xf32> to vector<16x128xbf16>
    %c0_2 = arith.constant 0 : index
    %c0_3 = arith.constant 0 : index
    %3 = vector.load %arg5[%c0_2, %c0_3] : memref<128x128xbf16, #tpu.memory_space<vmem>>, vector<128x128xbf16>
    %c0_4 = arith.constant 0 : index
    %c0_5 = arith.constant 0 : index
    %4 = vector.load %arg4[%c0_4, %c0_5] : memref<16x16xbf16, #tpu.memory_space<vmem>>, vector<16x16xbf16>
    %cst = arith.constant dense<0.000000e+00> : vector<16x128xf32>
    %5 = tpu.matmul %4, %2, %cst {dimension_numbers = #tpu.dot_dimension_numbers<[1], [0], [0], [1], [0, 0, 1, 1], [], []>} : vector<16x16xbf16>, vector<16x128xbf16>, vector<16x128xf32> -> vector<16x128xf32>
    %cst_6 = arith.constant dense<0.000000e+00> : vector<16x128xf32>
    %6 = tpu.matmul %2, %3, %cst_6 {dimension_numbers = #tpu.dot_dimension_numbers<[1], [0], [0], [1], [0, 0, 1, 1], [], []>} : vector<16x128xbf16>, vector<128x128xbf16>, vector<16x128xf32> -> vector<16x128xf32>
    %cst_7 = arith.constant 2.000000e+00 : f32
    %7 = vector.broadcast %cst_7 : f32 to vector<16x128xf32>
    %8 = arith.mulf %7, %1 : vector<16x128xf32>
    %9 = arith.subf %5, %8 : vector<16x128xf32>
    %10 = arith.addf %9, %6 : vector<16x128xf32>
    %c0_8 = arith.constant 0 : index
    %c0_9 = arith.constant 0 : index
    %c0_10 = arith.constant 0 : index
    %11 = vector.load %arg3[%c0_8, %c0_9, %c0_10] : memref<1x16x128xf32, #tpu.memory_space<vmem>>, vector<1x16x128xf32>
    %12 = vector.shape_cast %11 : vector<1x16x128xf32> to vector<16x128xf32>
    %13 = arith.addf %10, %12 : vector<16x128xf32>
    %c0_11 = arith.constant 0 : index
    %c0_12 = arith.constant 0 : index
    %c0_13 = arith.constant 0 : index
    %14 = vector.load %arg6[%c0_11, %c0_12, %c0_13] : memref<1x16x128xf32, #tpu.memory_space<vmem>>, vector<1x16x128xf32>
    %15 = vector.shape_cast %14 : vector<1x16x128xf32> to vector<16x128xf32>
    %16 = vector.shape_cast %13 : vector<16x128xf32> to vector<1x16x128xf32>
    tpu.vector_store %arg6[%c0_11, %c0_12, %c0_13], %16 {strides = array<i32>} : memref<1x16x128xf32, #tpu.memory_space<vmem>>, vector<1x16x128xf32>,
    return
  }
  func.func @transform_0(%arg0: i32, %arg1: i32) -> (i32, i32, i32) {
    %c0_i32 = arith.constant 0 : i32
    %c0_i32_0 = arith.constant 0 : i32
    return %arg0, %c0_i32, %arg1 : i32, i32, i32
  }
  func.func @transform_1(%arg0: i32, %arg1: i32) -> (i32, i32, i32) {
    %c0_i32 = arith.constant 0 : i32
    %c0_i32_0 = arith.constant 0 : i32
    return %arg0, %c0_i32, %arg1 : i32, i32, i32
  }
  func.func @transform_2(%arg0: i32, %arg1: i32) -> (i32, i32) {
    %c0_i32 = arith.constant 0 : i32
    %c0_i32_0 = arith.constant 0 : i32
    %c0_i32_1 = arith.constant 0 : i32
    return %c0_i32, %c0_i32_0 : i32, i32
  }
  func.func @transform_3(%arg0: i32, %arg1: i32) -> (i32, i32) {
    %c0_i32 = arith.constant 0 : i32
    %c0_i32_0 = arith.constant 0 : i32
    %c0_i32_1 = arith.constant 0 : i32
    return %c0_i32, %c0_i32_0 : i32, i32
  }
  func.func @transform_4(%arg0: i32, %arg1: i32) -> (i32, i32, i32) {
    %c0_i32 = arith.constant 0 : i32
    %c0_i32_0 = arith.constant 0 : i32
    return %arg0, %c0_i32, %arg1 : i32, i32, i32
  }
}

</mosaic_0001>

<bundles_post_ra>
// kernel: tpu_custom_call.1
= control target key start
LH: loop header
LB: loop body
LE: loop exit
PB: predicated region body
PF: predicated region fallthrough
CT: control target
= control target key end

     0   :  { %s1165_s0 = inlined_call_operand.hbm [shape: f32[2,16,128], index: 0, kind: input, shape index: {}]   ;;  %s1166_s1 = inlined_call_operand.hbm [shape: f32[2,16,128], index: 1, kind: input, shape index: {}]   ;;  %s1167_s2 = inlined_call_operand.hbm [shape: bf16[16,16], index: 2, kind: input, shape index: {}]   ;;  %s1168_s3 = inlined_call_operand.hbm [shape: bf16[128,128], index: 3, kind: input, shape index: {}]   ;;  %s1169_s4 = inlined_call_operand.hbm [shape: f32[2,16,128], index: 4, kind: output, shape index: {}]  }
   0x1   :  { %1172 = sst [smem:[#allocation18_spill]] %s1167_s2 }
   0x2   :  { %1173 = sst [smem:[#allocation19_spill]] %s1168_s3 }
   0x3   :  { %9 = vsyncpa [#allocation3], 0 }
   0x4   :  { %11 = vsyncpa [#allocation3 + $0x1], 0 }
   0x5   :  { %12 = vsyncpa [#allocation6], 0 }
   0x6   :  { %14 = vsyncpa [#allocation6 + $0x1], 0 }
   0x7   :  { %15 = vsyncpa [#allocation9], 0 }
   0x8   :  { %16 = vsyncpa [#allocation4], 0 }
   0x9   :  { %18 = vsyncpa [#allocation4 + $0x1], 0  ;;  %s993_s15 = smov 0   ;;  %s995_s16 = smov 0  }
   0xa   :  { %s997_s17 = smov 0   ;;  %s999_s18 = smov 0  }
   0xb   :  { %s1001_s19 = smov 0   ;;  %s1003_s20 = smov 0  }
   0xc LB: > { %1174 = sst [smem:[#allocation16_spill]] %s954_s19  ;;  %s1024_s21 = sadd.s32 4294967295, %s958_s20   ;;  %s958_s20 = sphi %s1003_s20, %s24_s20   ;;  %s954_s19 = sphi %s1001_s19, %s1184_s19   ;;  %s950_s18 = sphi %s999_s18, %s1183_s18   ;;  %s946_s17 = sphi %s997_s17, %s1187_s17   ;;  %s942_s16 = sphi %s995_s16, %s1186_s16   ;;  %s938_s15 = sphi %s993_s15, %s1185_s15  }
   0xd   : > { %s579_s22 = sadd.s32 4294967294, %s958_s20   ;;  %p58_p0 = scmp.ne.s32.totalorder %s942_s16, %s938_s15 }
   0xe   : > { %p59_p1 = scmp.eq.s32.totalorder %s1024_s21, 0  ;;  %p154_p2 = scmp.eq.s32.totalorder %s1024_s21, 1 }
   0xf   : > { %p160_p3 = scmp.eq.s32.totalorder %s579_s22, 1  ;;  %p580_p5 = scmp.ge.s32.totalorder %s958_s20, 1 }
  0x10   : > { %p1033_p4 = por %p59_p1, %p58_p0  ;;  %p167_p7 = scmp.lt.s32.totalorder %s958_s20, 3 }
  0x11   : > { %p1038_p6 = por %p160_p3, %p58_p0  ;;  %s1177_s2 = sld [smem:[#allocation18_spill]] }
  0x12   : > { %p1046_p8 = pnand %p580_p5, %p167_p7  ;;  %s960_s29 = smov [#allocation7]  }
  0x13   : > { %s180_s30 = sshll.u32 %s960_s29, 4  ;;  %p583_p11 = scmp.ge.s32.totalorder %s958_s20, 2  ;;  %s181_s30 = int_to_ptr.vmem [resolvable:$true] %s180_s30 }
  0x14   : > { %p664_p9 = pneg %p1046_p8  ;;  %s1179_s3 = sld [smem:[#allocation19_spill]] }
  0x15   : > { %s961_s8 = smov 64   ;;  %s962_s9 = smov 4  }
  0x16   : > { %p665_p10 = pnand %p664_p9, %p59_p1  ;;  %s963_s10 = smov [#allocation8]  }
  0x17   : > { %s178_s27 = sshll.u32 %s1177_s2, 4  ;;  %s194_s11 = sshll.u32 %s963_s10, 4  ;;  %s179_s27 = int_to_ptr.hbm [resolvable:$true] %s178_s27  ;;  %s195_s11 = int_to_ptr.vmem [resolvable:$true] %s194_s11 }
  0x18   : > { %667 = dma.hbm_to_vmem [thread:$0]  (!%p665_p10), %s179_s27, 128, %s181_s30, [#allocation6], %s961_s8, %s961_s8, %s962_s9  }
  0x19   : > { %s36_s12 = sadd.s32 1, %s954_s19  ;;  %s45_s13 = sadd.s32 1, %s946_s17 }
  0x1a   : > { %s192_s7 = sshll.u32 %s1179_s3, 4  ;;  %p38_p12 = scmp.ge.s32.totalorder %s36_s12, 2  ;;  %s193_s7 = int_to_ptr.hbm [resolvable:$true] %s192_s7 }
  0x1b   : > { %670 = dma.hbm_to_vmem [thread:$0]  (!%p665_p10), %s193_s7, 1024, %s195_s11, [#allocation9], %s961_s8, %s961_s8, %s962_s9  }
  0x1c   : > { %p52_p13 = scmp.ne.s32.totalorder %s946_s17, %s942_s16  ;;  %p53_p0 = scmp.eq.s32.totalorder %s958_s20, 0 }
  0x1d   : > { %p684_p3 = scmp.lt.s32.totalorder %s958_s20, 2  ;;  %s1189_s12 = smov (%p38_p12, %s36_s12), 0 }
  0x1e   : > { %1180 = sst [smem:[#allocation17_spill]] %s1189_s12  ;;  %p1066_p5 = por %p53_p0, %p52_p13 }
  0x1f   : > { %p1072_p7 = por %p154_p2, %p52_p13  ;;  %s40_s25 = ssub.s32 %s954_s19, %s1189_s12 }
  0x20   : > { %s208_s26 = sand.u32 1, %s946_s17   ;;  %p43_p9 = scmp.eq.s32.totalorder %s40_s25, 0 }
  0x21   : > { %s584_s27 = sshll.u32 %s208_s26, 4  ;;  %s638_s29 = sshll.u32 %s954_s19, 4 }
  0x22   : > { %s1081_s30 = scalar_select %p43_p9, %s946_s17, %s45_s13  }
  0x23   : > { %s218_s7 = scalar_lea.hbm %s1165_s0, %s638_s29  ;;  %s212_s9 = scalar_lea.vmem [#allocation2], %s584_s27 }
  0x24   : > { %s219_s8 = sshll.u32 %s218_s7, 4  ;;  %s221_s10 = sshll.u32 %s212_s9, 4  ;;  %s220_s8 = int_to_ptr.hbm [resolvable:$true] %s219_s8  ;;  %s222_s10 = int_to_ptr.vmem [resolvable:$true] %s221_s10 }
  0x25   : > { %p672_p2 = pnand %p684_p3, %p1066_p5  ;;  %s241_s25 = scalar_lea.hbm %s1166_s1, %s638_s29 }
  0x26   : > { %s209_s3 = scalar_lea.sflag [#allocation3], %s208_s26  ;;  %s964_s13 = smov 128  }
  0x27   : > { %s965_s12 = smov 8   ;;  %s242_s19 = sshll.u32 %s241_s25, 4  ;;  %s243_s19 = int_to_ptr.hbm [resolvable:$true] %s242_s19 }
  0x28   : > { %674 = dma.hbm_to_vmem [thread:$0]  (!%p672_p2), %s220_s8, 256, %s222_s10, %s209_s3, %s964_s13, %s964_s13, %s965_s12  }
  0x29   : > { %s235_s5 = scalar_lea.vmem [#allocation5], %s584_s27  ;;  %s231_s7 = sand.u32 1, %s958_s20  }
  0x2a   : > { %s244_s6 = sshll.u32 %s235_s5, 4  ;;  %s232_s9 = scalar_lea.sflag [#allocation6], %s231_s7  ;;  %s245_s6 = int_to_ptr.vmem [resolvable:$true] %s244_s6 }
  0x2b   : > { %677 = dma.hbm_to_vmem [thread:$0]  (!%p672_p2), %s243_s19, 256, %s245_s6, %s232_s9, %s964_s13, %s964_s13, %s965_s12  }
  0x2c   : > { %256 = sbr.rel (%p1046_p8) target bundleno = 231 (0xe7), region = 36  ;;  %s1097_s14 = sand.u32 (!%p1046_p8), 1, %s942_s16  }
  0x2d   : > { %s1100_s2 = sshll.u32 (!%p1046_p8), %s1097_s14, 4  ;;  %s259_s3 = scalar_lea.sflag (!%p1046_p8), [#allocation3], %s1097_s14 }
  0x2e   : > { %s262_s26 = scalar_lea.vmem (!%p1046_p8), [#allocation2], %s1100_s2 }
  0x31   : > { %917 = dma.done.wait (%p1033_p4), %s259_s3, 256  }
  0x32   : > { %919 = vsyncadd (%p1033_p4), %s259_s3, 4294967040  ;;  %s268_s19 = sand.u32 1, %s1024_s21   ;;  %s272_s12 = scalar_lea.vmem [#allocation5], %s1100_s2 }
  0x33   : > { %s269_s28 = scalar_lea.sflag [#allocation6], %s268_s19 }
  0x34   : > { %921 = dma.done.wait (%p1033_p4), %s269_s28, 256  }
  0x35   : > { %923 = vsyncadd (%p1033_p4), %s269_s28, 4294967040 }
  0x36   : > { %925 = dma.done.wait (%p59_p1), [#allocation6], 128  }
  0x37   : > { %927 = vsyncadd (%p59_p1), [#allocation6], 4294967168 }
  0x38   : > { %929 = dma.done.wait (%p59_p1), [#allocation9], 1024  }
  0x39   : > { %931 = vsyncadd (%p59_p1), [#allocation9], 4294966272  ;;  %v647_v0 = vld [vmem:[#allocation8 + $0x38] sm:$0xff]  ;;  %v646_v2 = vld [vmem:[#allocation8 + $0x30] sm:$0xff]  ;;  %vm340_vm0 = vcmask 130048   ;;  %s649_s21 = sshll.u32 %s950_s18, 4 }
  0x3a   : > { %v314_v1 = vld [vmem:[%s262_s26] sm:$0xff]  ;;  %406 = vmatpush.bf16.msra.mxu1 %v647_v0  ;;  %v315_v3 = vld [vmem:[%s262_s26 + $0x8] sm:$0xff]  ;;  %s445_s29 = scalar_lea.hbm %s1169_s4, %s649_s21  ;;  %s312_s8 = scalar_lea.vmem [#allocation10], %s1100_s2 }
  0x3b   : > { %v316_v4 = vpack.c.bf16 %v315_v3, %v314_v1  ;;  %v648_v5 = vld [vmem:[#allocation7] sm:$0xff]  ;;  %v645_v6 = vld [vmem:[#allocation8 + $0x28] sm:$0xff]  ;;  %v644_v7 = vld [vmem:[#allocation8 + $0x20] sm:$0xff]  ;;  %v420_v12 = vmul.f32 2.0, %v314_v1  ;;  %v421_v18 = vmul.f32 2.0, %v315_v3  ;;  %s446_s10 = sshll.u32 %s312_s8, 4  ;;  %s447_s10 = int_to_ptr.vmem [resolvable:$true] %s446_s10 }
  0x3c   : > { %v643_v8 = vld [vmem:[#allocation8 + $0x18] sm:$0xff]  ;;  %v642_v9 = vld [vmem:[#allocation8 + $0x10] sm:$0xff]  ;;  %v641_v10 = vld [vmem:[#allocation8 + $0x8] sm:$0xff]  ;;  %s448_s11 = sshll.u32 %s445_s29, 4  ;;  %s433_s18 = scalar_lea.sflag [#allocation4], %s1097_s14  ;;  %s449_s11 = int_to_ptr.hbm [resolvable:$true] %s448_s11 }
  0x3d   : > { %351 = vmatpush.bf16.msra.mxu0 %v316_v4  ;;  %v640_v11 = vld [vmem:[#allocation8] sm:$0xff]  ;;  %v426_v16 = vld [vmem:[%s272_s12] sm:$0xff]  ;;  %s878_s25 = sshra.s32 %s449_s11, 4  ;;  %s884_s7 = scalar_lea.hbm %s1169_s4, 32  ;;  %s879_s25 = int_to_ptr.hbm [resolvable:$true] %s878_s25 }
  0x3e   : > { %407 = vmatpush.bf16.msra.mxu1 %v646_v2  ;;  %v427_v23 = vld [vmem:[%s272_s12 + $0x8] sm:$0xff]  ;;  %s880_s13 = scalar_lea.hbm %s879_s25, 16  ;;  %p885_p10 = scmp.lt.s32.totalorder %s879_s25, %s1169_s4 }
  0x3f   : > { %p881_p1 = scmp.ne.s32.totalorder %s879_s25, %s880_s13  ;;  %p886_p12 = scmp.lt.s32.totalorder %s884_s7, %s880_s13 }
  0x40   : > { %600 = vmatmul.msk.bf16.vlgmr.msra.gmra.mxu0 %vm340_vm0, %v648_v5 }
  0x41   : > { %p882_p4 = pnand %p881_p1, %p1072_p7  ;;  %p887_p13 = por %p886_p12, %p885_p10 }
  0x42   : > { %408 = vmatpush.bf16.msra.mxu1 %v645_v6 }
  0x43   : > { %p883_p8 = pneg %p882_p4 }
  0x45   : > { %p888_p0 = pnand %p887_p13, %p883_p8 }
  0x46   : > { %409 = vmatpush.bf16.msra.mxu1 %v644_v7 }
  0x4a   : > { %410 = vmatpush.bf16.msra.mxu1 %v643_v8 }
  0x4e   : > { %411 = vmatpush.bf16.msra.mxu1 %v642_v9 }
  0x52   : > { %412 = vmatpush.bf16.msra.mxu1 %v641_v10 }
  0x56   : > { %413 = vmatpush.bf16.msra.mxu1 %v640_v11 }
  0x59   : > { %414 = vmatmul.bf16.vlgmr.msra.gmra.mxu1 %v316_v4 }
  0xbd   : > { %v353_v13 = vpop.f32.mrf.mxu0 }
  0xbe   : > { %v422_v14 = vsub.f32 %v353_v13, %v420_v12 }
  0xc5   : > { %v355_v20 = vpop.f32.mrf.mxu0 }
  0xc6   : > { %v423_v21 = vsub.f32 %v355_v20, %v421_v18 }
  0xd6   : > { %v415_v15 = vpop.f32.mrf.mxu1 }
  0xd7   : > { %v424_v17 = vadd.f32 %v422_v14, %v415_v15 }
  0xd9   : > { %v428_v19 = vadd.f32 %v426_v16, %v424_v17 }
  0xdb   : > { %430 = vst [vmem:[%s312_s8] sm:$0xff] %v428_v19 }
  0xde   : > { %v417_v22 = vpop.f32.mrf.mxu1 }
  0xdf   : > { %v425_v24 = vadd.f32 %v423_v21, %v417_v22 }
  0xe1   : > { %v429_v25 = vadd.f32 %v427_v23, %v425_v24 }
  0xe3   : > { %431 = vst [vmem:[%s312_s8 + $0x8] sm:$0xff] %v429_v25 }
  0xe4   : > { %891 = shalt.err (!%p888_p0)
}
  0xe5   : > { %s966_s14 = smov 128   ;;  %s967_s3 = smov 8  }
  0xe6   : > { %662 = dma.vmem_to_hbm [thread:$0]  (%p1072_p7), %s447_s10, 256, %s449_s11, %s433_s18, %s966_s14, %s966_s14, %s967_s3  }
  0xe7 PF: > { %s463_s26 = sand.u32 1, %s938_s15   ;;  %p679_p3 = pnand %p583_p11, %p1038_p6 }
  0xe8   : > { %s464_s19 = scalar_lea.sflag [#allocation4], %s463_s26 }
  0xe9   : > { %p680_p5 = pneg %p679_p3 }
  0xeb   : > { %933 = dma.done.wait (%p680_p5), %s464_s19, 256  }
  0xec   : > { %935 = vsyncadd (%p680_p5), %s464_s19, 4294967040  ;;  %s24_s20 = sadd.s32 1, %s958_s20   ;;  %s1183_s18 = sld [smem:[#allocation16_spill]] }
  0xed   : > { %p21_p9 = scmp.ge.s32.totalorder %s24_s20, 4   ;;  %s1184_s19 = sld [smem:[#allocation17_spill]] }
  0xee   : > { %s1185_s15 = smov %s942_s16  ;;  %s1186_s16 = smov %s946_s17 }
  0xef   : > { %s1187_s17 = smov %s1081_s30  ;;  %23 = sbr.rel (!%p21_p9) target bundleno = 12 (0xc), region = 102 }
  0xf4   :  { %470 = vsyncpa [#allocation3], 1 }
  0xf5   :  { %472 = vsyncpa [#allocation3 + $0x1], 1 }
  0xf6   :  { %473 = vsyncpa [#allocation6], 1 }
  0xf7   :  { %475 = vsyncpa [#allocation6 + $0x1], 1 }
  0xf8   :  { %476 = vsyncpa [#allocation9], 1 }
  0xf9   :  { %477 = vsyncpa [#allocation4], 1 }
  0xfa   :  { %479 = vsyncpa [#allocation4 + $0x1], 1 }

</bundles_post_ra>
